<compile_context>
chip_gen: v5e
topology: v5e:2x2
jax: 0.10.0
libtpu: 0.0.40
codegen_flags: <defaults>
</compile_context>

<pallas_src>
import functools

import jax
import jax.numpy as jnp
from jax.experimental import pallas as pl
from jax.experimental.pallas import tpu as pltpu

H1 = 400
H2 = 300
H1_PAD = 512   # 400 -> next multiple of 128
H2_PAD = 384   # 300 -> next multiple of 128
LANE = 128
BF16_SUBLANE = 16


def _round_up(x, m):
    return ((x + m - 1) // m) * m


def _choose_batch_tile(batch, batch_block):
    """Large tiles to amortize per-grid-step overhead, but keep the grid at
    >= 2 steps whenever the batch exceeds one tile so v7x's two TensorCores
    both get work from the 'parallel' axis."""
    if batch <= 16:
        return batch                       # one tile == full array (always legal)
    half = pl.cdiv(batch, 2)
    granule = 256 if half >= 256 else 8    # 256-multiple tiles when large
    return min(batch_block, _round_up(half, granule))


# --------------------------------------------------------------------------
# Kernel: one batch tile; all (padded, bf16) weights resident in VMEM.
# --------------------------------------------------------------------------
def actor_kernel(x_ref, w1_ref, b1_ref, w2_ref, b2_ref, w3_ref, b3_ref,
                 o_ref, xpad_ref, *, state_dim):
    k1 = xpad_ref.shape[1]

    if k1 == state_dim:
        xb = x_ref[...].astype(jnp.bfloat16)                 # (TB, K1) bf16
    else:
        # In-kernel zero-pad of the contraction dim (state_dim -> K1) with
        # explicit zeros, via a tiny VMEM scratch (no wrapper-side pad/cast).
        xpad_ref[...] = jnp.zeros_like(xpad_ref)
        xpad_ref[:, :state_dim] = x_ref[...].astype(jnp.bfloat16)
        xb = xpad_ref[...]                                    # (TB, K1) bf16

    h1 = jnp.dot(xb, w1_ref[...], preferred_element_type=jnp.float32) + b1_ref[...]
    h1 = jnp.maximum(h1, 0.0).astype(jnp.bfloat16)            # ReLU, bf16 for MXU

    h2 = jnp.dot(h1, w2_ref[...], preferred_element_type=jnp.float32) + b2_ref[...]
    h2 = jnp.maximum(h2, 0.0).astype(jnp.bfloat16)            # ReLU, bf16 for MXU

    y = jnp.dot(h2, w3_ref[...], preferred_element_type=jnp.float32) + b3_ref[...]
    o_ref[...] = jnp.tanh(y).astype(o_ref.dtype)              # Tanh (EUP)


# --------------------------------------------------------------------------
# Wrapper
# --------------------------------------------------------------------------
def actor_forward(x, padded_params, action_dim, *, batch_block=512):
    """x: (B, state_dim) float32 -> (B, action_dim) float32."""
    w1, b1, w2, b2, w3, b3 = padded_params
    B, state_dim = x.shape
    k1 = w1.shape[0]          # state_dim rounded to bf16 sublane multiple (16)
    a_pad = w3.shape[1]       # action_dim rounded to 128 (lane-dense stores)

    tb = _choose_batch_tile(B, batch_block)
    grid = (pl.cdiv(B, tb),)

    weight_bytes = sum(int(a.size) * a.dtype.itemsize for a in padded_params)
    cost = pl.CostEstimate(
        flops=2 * B * (k1 * H1_PAD + H1_PAD * H2_PAD + H2_PAD * a_pad),
        transcendentals=B * a_pad,                               # tanh
        bytes_accessed=weight_bytes + B * state_dim * 4 + B * a_pad * 4,
    )

    out = pl.pallas_call(
        functools.partial(actor_kernel, state_dim=state_dim),
        out_shape=jax.ShapeDtypeStruct((B, a_pad), jnp.float32),
        grid=grid,
        in_specs=[
            pl.BlockSpec((tb, state_dim), lambda i: (i, 0)),   # raw f32 x, batch-tiled
            pl.BlockSpec(w1.shape, lambda i: (0, 0)),          # weights / biases:
            pl.BlockSpec(b1.shape, lambda i: (0, 0)),          # constant index_map ->
            pl.BlockSpec(w2.shape, lambda i: (0, 0)),          # fetched once, stay
            pl.BlockSpec(b2.shape, lambda i: (0, 0)),          # VMEM-resident across
            pl.BlockSpec(w3.shape, lambda i: (0, 0)),          # batch tiles
            pl.BlockSpec(b3.shape, lambda i: (0, 0)),
        ],
        out_specs=pl.BlockSpec((tb, a_pad), lambda i: (i, 0)),
        scratch_shapes=[pltpu.VMEM((tb, k1), jnp.bfloat16)],   # in-kernel x pad buffer
        compiler_params=pltpu.CompilerParams(
            dimension_semantics=("parallel",),                 # megacore over batch
        ),
        cost_estimate=cost,
    )(x, w1, b1, w2, b2, w3, b3)

    return out[:, :action_dim]


# --------------------------------------------------------------------------
# Parameter construction
# --------------------------------------------------------------------------
def init_params(key, state_dim, action_dim):
    """f32 params mimicking PyTorch Linear default init (uniform +-1/sqrt(fan_in))."""
    ks = jax.random.split(key, 6)

    def linear(kw, kb, fan_in, fan_out):
        bound = 1.0 / jnp.sqrt(fan_in)
        w = jax.random.uniform(kw, (fan_in, fan_out), jnp.float32, -bound, bound)
        b = jax.random.uniform(kb, (1, fan_out), jnp.float32, -bound, bound)
        return w, b

    w1, b1 = linear(ks[0], ks[1], state_dim, H1)
    w2, b2 = linear(ks[2], ks[3], H1, H2)
    w3, b3 = linear(ks[4], ks[5], H2, action_dim)
    return (w1, b1, w2, b2, w3, b3)


def prepare_params(params_f32, state_dim, action_dim):
    """Zero-pad hidden dims to 128-multiples, layer-1 K only to 16 (bf16 sublane);
    weights -> bf16 (halved DMA), biases stay f32.
    (Optional v5e/v6e variant: store weights int8 + per-channel scales.)"""
    w1, b1, w2, b2, w3, b3 = params_f32
    k1 = _round_up(state_dim, BF16_SUBLANE)   # 8 -> 16, NOT 128
    a_pad = _round_up(action_dim, LANE)

    def pad2(a, rows, cols):
        return jnp.zeros((rows, cols), a.dtype).at[: a.shape[0], : a.shape[1]].set(a)

    return (
        pad2(w1, k1, H1_PAD).astype(jnp.bfloat16),
        pad2(b1, 1, H1_PAD),
        pad2(w2, H1_PAD, H2_PAD).astype(jnp.bfloat16),
        pad2(b2, 1, H2_PAD),
        pad2(w3, H2_PAD, a_pad).astype(jnp.bfloat16),
        pad2(b3, 1, a_pad),
    )


# --------------------------------------------------------------------------
# References
# --------------------------------------------------------------------------
def actor_reference_f32(x, params_f32):
    w1, b1, w2, b2, w3, b3 = params_f32
    h1 = jnp.maximum(x @ w1 + b1, 0.0)
    h2 = jnp.maximum(h1 @ w2 + b2, 0.0)
    return jnp.tanh(h2 @ w3 + b3)


def actor_reference_bf16(x, params_f32):
    """Emulates the kernel's bf16 operand / f32-accumulate numerics in plain XLA."""
    w1, b1, w2, b2, w3, b3 = params_f32
    bf = lambda a: a.astype(jnp.bfloat16).astype(jnp.float32)
    h1 = jnp.maximum(bf(x) @ bf(w1) + b1, 0.0)
    h2 = jnp.maximum(bf(h1) @ bf(w2) + b2, 0.0)
    return jnp.tanh(bf(h2) @ bf(w3) + b3)


# --------------------------------------------------------------------------
if __name__ == "__main__":
    state_dim, action_dim = 8, 4

    key = jax.random.PRNGKey(0)
    k_x, k_p, k_big = jax.random.split(key, 3)

    params_f32 = init_params(k_p, state_dim, action_dim)
    params = prepare_params(params_f32, state_dim, action_dim)

    # Small batch (spec-implied shape): single grid step, tile == full batch.
    batch = 2
    x = jax.random.normal(k_x, (batch, state_dim), jnp.float32)
    out = jax.block_until_ready(actor_forward(x, params, action_dim))
    assert out.shape == (batch, action_dim)
    ref_bf = actor_reference_bf16(x, params_f32)
    ref_f32 = actor_reference_f32(x, params_f32)
    assert jnp.allclose(out, ref_bf, atol=2e-3, rtol=2e-3)
    assert jnp.allclose(out, ref_f32, atol=5e-2, rtol=5e-2)

    # Larger batch: exercises the multi-step "parallel" batch grid (2 x 128 rows).
    big_batch = 256
    xb_in = jax.random.normal(k_big, (big_batch, state_dim), jnp.float32)
    out_b = jax.block_until_ready(actor_forward(xb_in, params, action_dim))
    assert out_b.shape == (big_batch, action_dim)
    assert jnp.allclose(out_b, actor_reference_bf16(xb_in, params_f32),
                        atol=2e-3, rtol=2e-3)

    print("KERNEL_OK")
</pallas_src>

<mosaic_0001>
module attributes {stable_mosaic.version = 11 : i64} {
  func.func @actor_kernel(%arg0: i32, %arg1: memref<2x8xf32, #tpu.memory_space<vmem>>, %arg2: memref<16x512xbf16, #tpu.memory_space<vmem>>, %arg3: memref<1x512xf32, #tpu.memory_space<vmem>>, %arg4: memref<512x384xbf16, #tpu.memory_space<vmem>>, %arg5: memref<1x384xf32, #tpu.memory_space<vmem>>, %arg6: memref<384x128xbf16, #tpu.memory_space<vmem>>, %arg7: memref<1x128xf32, #tpu.memory_space<vmem>>, %arg8: memref<2x128xf32, #tpu.memory_space<vmem>>, %arg9: memref<2x16xbf16, #tpu.memory_space<vmem>>) attributes {dimension_semantics = [#tpu.dimension_semantics<parallel>], iteration_bounds = array<i64: 1>, scalar_prefetch = 0 : i64, scratch_operands = 1 : i64, tpu.core_type = #tpu.core_type<tc>, window_params = [{transform_indices = @transform_0, window_bounds = array<i64: 2, 8>}, {pipeline_mode = #tpu.pipeline_mode<synchronous>, transform_indices = @transform_1, window_bounds = array<i64: 16, 512>}, {pipeline_mode = #tpu.pipeline_mode<synchronous>, transform_indices = @transform_2, window_bounds = array<i64: 1, 512>}, {pipeline_mode = #tpu.pipeline_mode<synchronous>, transform_indices = @transform_3, window_bounds = array<i64: 512, 384>}, {pipeline_mode = #tpu.pipeline_mode<synchronous>, transform_indices = @transform_4, window_bounds = array<i64: 1, 384>}, {pipeline_mode = #tpu.pipeline_mode<synchronous>, transform_indices = @transform_5, window_bounds = array<i64: 384, 128>}, {pipeline_mode = #tpu.pipeline_mode<synchronous>, transform_indices = @transform_6, window_bounds = array<i64: 1, 128>}, {transform_indices = @transform_7, window_bounds = array<i64: 2, 128>}]} {
    %cst = arith.constant 0.000000e+00 : bf16
    %0 = vector.broadcast %cst : bf16 to vector<2x16xbf16>
    %c0 = arith.constant 0 : index
    %c0_0 = arith.constant 0 : index
    %1 = vector.load %arg9[%c0, %c0_0] : memref<2x16xbf16, #tpu.memory_space<vmem>>, vector<2x16xbf16>
    tpu.vector_store %arg9[%c0, %c0_0], %0 {strides = array<i32>} : memref<2x16xbf16, #tpu.memory_space<vmem>>, vector<2x16xbf16>,
    %c0_1 = arith.constant 0 : index
    %c0_2 = arith.constant 0 : index
    %2 = vector.load %arg1[%c0_1, %c0_2] : memref<2x8xf32, #tpu.memory_space<vmem>>, vector<2x8xf32>
    %3 = arith.truncf %2 : vector<2x8xf32> to vector<2x8xbf16>
    %c0_3 = arith.constant 0 : index
    %c0_4 = arith.constant 0 : index
    %4 = vector.load %arg9[%c0_3, %c0_4] : memref<2x16xbf16, #tpu.memory_space<vmem>>, vector<2x8xbf16>
    tpu.vector_store %arg9[%c0_3, %c0_4], %3 {strides = array<i32>} : memref<2x16xbf16, #tpu.memory_space<vmem>>, vector<2x8xbf16>,
    %c0_5 = arith.constant 0 : index
    %c0_6 = arith.constant 0 : index
    %5 = vector.load %arg9[%c0_5, %c0_6] : memref<2x16xbf16, #tpu.memory_space<vmem>>, vector<2x16xbf16>
    %c0_7 = arith.constant 0 : index
    %c0_8 = arith.constant 0 : index
    %6 = vector.load %arg2[%c0_7, %c0_8] : memref<16x512xbf16, #tpu.memory_space<vmem>>, vector<16x512xbf16>
    %cst_9 = arith.constant dense<0.000000e+00> : vector<2x512xf32>
    %7 = tpu.matmul %5, %6, %cst_9 {dimension_numbers = #tpu.dot_dimension_numbers<[1], [0], [0], [1], [0, 0, 1, 1], [], []>} : vector<2x16xbf16>, vector<16x512xbf16>, vector<2x512xf32> -> vector<2x512xf32>
    %c0_10 = arith.constant 0 : index
    %c0_11 = arith.constant 0 : index
    %8 = vector.load %arg3[%c0_10, %c0_11] : memref<1x512xf32, #tpu.memory_space<vmem>>, vector<1x512xf32>
    %9 = vector.broadcast %8 : vector<1x512xf32> to vector<2x512xf32>
    %10 = arith.addf %7, %9 : vector<2x512xf32>
    %cst_12 = arith.constant 0.000000e+00 : f32
    %11 = vector.broadcast %cst_12 : f32 to vector<2x512xf32>
    %12 = arith.maximumf %10, %11 : vector<2x512xf32>
    %13 = arith.truncf %12 : vector<2x512xf32> to vector<2x512xbf16>
    %c0_13 = arith.constant 0 : index
    %c0_14 = arith.constant 0 : index
    %14 = vector.load %arg4[%c0_13, %c0_14] : memref<512x384xbf16, #tpu.memory_space<vmem>>, vector<512x384xbf16>
    %cst_15 = arith.constant dense<0.000000e+00> : vector<2x384xf32>
    %15 = tpu.matmul %13, %14, %cst_15 {dimension_numbers = #tpu.dot_dimension_numbers<[1], [0], [0], [1], [0, 0, 1, 1], [], []>} : vector<2x512xbf16>, vector<512x384xbf16>, vector<2x384xf32> -> vector<2x384xf32>
    %c0_16 = arith.constant 0 : index
    %c0_17 = arith.constant 0 : index
    %16 = vector.load %arg5[%c0_16, %c0_17] : memref<1x384xf32, #tpu.memory_space<vmem>>, vector<1x384xf32>
    %17 = vector.broadcast %16 : vector<1x384xf32> to vector<2x384xf32>
    %18 = arith.addf %15, %17 : vector<2x384xf32>
    %cst_18 = arith.constant 0.000000e+00 : f32
    %19 = vector.broadcast %cst_18 : f32 to vector<2x384xf32>
    %20 = arith.maximumf %18, %19 : vector<2x384xf32>
    %21 = arith.truncf %20 : vector<2x384xf32> to vector<2x384xbf16>
    %c0_19 = arith.constant 0 : index
    %c0_20 = arith.constant 0 : index
    %22 = vector.load %arg6[%c0_19, %c0_20] : memref<384x128xbf16, #tpu.memory_space<vmem>>, vector<384x128xbf16>
    %cst_21 = arith.constant dense<0.000000e+00> : vector<2x128xf32>
    %23 = tpu.matmul %21, %22, %cst_21 {dimension_numbers = #tpu.dot_dimension_numbers<[1], [0], [0], [1], [0, 0, 1, 1], [], []>} : vector<2x384xbf16>, vector<384x128xbf16>, vector<2x128xf32> -> vector<2x128xf32>
    %c0_22 = arith.constant 0 : index
    %c0_23 = arith.constant 0 : index
    %24 = vector.load %arg7[%c0_22, %c0_23] : memref<1x128xf32, #tpu.memory_space<vmem>>, vector<1x128xf32>
    %25 = vector.broadcast %24 : vector<1x128xf32> to vector<2x128xf32>
    %26 = arith.addf %23, %25 : vector<2x128xf32>
    %27 = math.tanh %26 : vector<2x128xf32>
    %c0_24 = arith.constant 0 : index
    %c0_25 = arith.constant 0 : index
    %28 = vector.load %arg8[%c0_24, %c0_25] : memref<2x128xf32, #tpu.memory_space<vmem>>, vector<2x128xf32>
    tpu.vector_store %arg8[%c0_24, %c0_25], %27 {strides = array<i32>} : memref<2x128xf32, #tpu.memory_space<vmem>>, vector<2x128xf32>,
    return
  }
  func.func @transform_0(%arg0: i32) -> (i32, i32) {
    %c0_i32 = arith.constant 0 : i32
    %c0_i32_0 = arith.constant 0 : i32
    return %arg0, %c0_i32 : i32, i32
  }
  func.func @transform_1(%arg0: i32) -> (i32, i32) {
    %c0_i32 = arith.constant 0 : i32
    %c0_i32_0 = arith.constant 0 : i32
    %c0_i32_1 = arith.constant 0 : i32
    return %c0_i32, %c0_i32_0 : i32, i32
  }
  func.func @transform_2(%arg0: i32) -> (i32, i32) {
    %c0_i32 = arith.constant 0 : i32
    %c0_i32_0 = arith.constant 0 : i32
    %c0_i32_1 = arith.constant 0 : i32
    return %c0_i32, %c0_i32_0 : i32, i32
  }
  func.func @transform_3(%arg0: i32) -> (i32, i32) {
    %c0_i32 = arith.constant 0 : i32
    %c0_i32_0 = arith.constant 0 : i32
    %c0_i32_1 = arith.constant 0 : i32
    return %c0_i32, %c0_i32_0 : i32, i32
  }
  func.func @transform_4(%arg0: i32) -> (i32, i32) {
    %c0_i32 = arith.constant 0 : i32
    %c0_i32_0 = arith.constant 0 : i32
    %c0_i32_1 = arith.constant 0 : i32
    return %c0_i32, %c0_i32_0 : i32, i32
  }
  func.func @transform_5(%arg0: i32) -> (i32, i32) {
    %c0_i32 = arith.constant 0 : i32
    %c0_i32_0 = arith.constant 0 : i32
    %c0_i32_1 = arith.constant 0 : i32
    return %c0_i32, %c0_i32_0 : i32, i32
  }
  func.func @transform_6(%arg0: i32) -> (i32, i32) {
    %c0_i32 = arith.constant 0 : i32
    %c0_i32_0 = arith.constant 0 : i32
    %c0_i32_1 = arith.constant 0 : i32
    return %c0_i32, %c0_i32_0 : i32, i32
  }
  func.func @transform_7(%arg0: i32) -> (i32, i32) {
    %c0_i32 = arith.constant 0 : i32
    %c0_i32_0 = arith.constant 0 : i32
    return %arg0, %c0_i32 : i32, i32
  }
}

</mosaic_0001>

<bundles_post_ra>
// kernel: tpu_custom_call.1
= control target key start
LH: loop header
LB: loop body
LE: loop exit
PB: predicated region body
PF: predicated region fallthrough
CT: control target
= control target key end

     0   :  { %12 = vsyncpa [#allocation4], 0  ;;  %s2179_s0 = inlined_call_operand.hbm [shape: f32[2,8], index: 0, kind: input, shape index: {}]   ;;  %s2180_s1 = inlined_call_operand.hbm [shape: bf16[16,512], index: 1, kind: input, shape index: {}]   ;;  %s2181_s2 = inlined_call_operand.hbm [shape: f32[1,512], index: 2, kind: input, shape index: {}]   ;;  %s2182_s3 = inlined_call_operand.hbm [shape: bf16[512,384], index: 3, kind: input, shape index: {}]   ;;  %s2183_s4 = inlined_call_operand.vmem [shape: f32[1,384], index: 4, kind: input, shape index: {}]   ;;  %s2184_s5 = inlined_call_operand.hbm [shape: bf16[384,128], index: 5, kind: input, shape index: {}]   ;;  %s2185_s6 = inlined_call_operand.vmem [shape: f32[1,128], index: 6, kind: input, shape index: {}]   ;;  %s2186_s7 = inlined_call_operand.hbm [shape: f32[2,128], index: 7, kind: output, shape index: {}]  }
   0x1   :  { %13 = vsyncpa [#allocation7], 0 }
   0x2   :  { %14 = vsyncpa [#allocation10], 0  ;;  %s31_s26 = sshll.u32 %s2180_s1, 4  ;;  %s32_s26 = int_to_ptr.hbm [resolvable:$true] %s31_s26 }
   0x3   :  { %15 = vsyncpa [#allocation5], 0  ;;  %s2065_s27 = smov [#allocation6]   ;;  %s55_s8 = sshll.u32 %s2182_s3, 4  ;;  %s56_s8 = int_to_ptr.hbm [resolvable:$true] %s55_s8 }
   0x4   :  { %s33_s28 = sshll.u32 %s2065_s27, 4  ;;  %s2066_s9 = smov 256   ;;  %s34_s28 = int_to_ptr.vmem [resolvable:$true] %s33_s28 }
   0x5   :  { %s2067_s10 = smov 16   ;;  %s2068_s11 = smov [#allocation9]  }
   0x6   :  { %39 = dma.hbm_to_vmem [thread:$0]  %s32_s26, 512, %s34_s28, [#allocation7], %s2066_s9, %s2066_s9, %s2067_s10  }
   0x7   :  { %s57_s12 = sshll.u32 %s2068_s11, 4  ;;  %s2069_s13 = smov 192   ;;  %s58_s12 = int_to_ptr.vmem [resolvable:$true] %s57_s12 }
   0x8   :  { %s2070_s14 = smov 12   ;;  %s21_s16 = sshll.u32 %s2179_s0, 4  ;;  %s22_s16 = int_to_ptr.hbm [resolvable:$true] %s21_s16 }
   0x9   :  { %63 = dma.hbm_to_vmem [thread:$0]  %s56_s8, 12288, %s58_s12, [#allocation10], %s2069_s13, %s2069_s13, %s2070_s14  }
   0xa   :  { %s2071_s17 = smov [#allocation3]   ;;  %s45_s20 = sshll.u32 %s2181_s2, 4  ;;  %s46_s20 = int_to_ptr.hbm [resolvable:$true] %s45_s20 }
   0xb   :  { %s23_s18 = sshll.u32 %s2071_s17, 4  ;;  %s2072_s21 = smov [#allocation8]   ;;  %s24_s18 = int_to_ptr.vmem [resolvable:$true] %s23_s18 }
   0xc   :  { %26 = dma.hbm_to_vmem [thread:$0]  %s22_s16, 32, %s24_s18, [#allocation4]  }
   0xd   :  { %s47_s22 = sshll.u32 %s2072_s21, 4  ;;  %s70_s25 = sshll.u32 %s2184_s5, 4  ;;  %s48_s22 = int_to_ptr.vmem [resolvable:$true] %s47_s22  ;;  %s71_s25 = int_to_ptr.hbm [resolvable:$true] %s70_s25 }
   0xe   :  { %50 = dma.hbm_to_vmem [thread:$0]  %s46_s20, 64, %s48_s22, [#allocation7]  }
   0xf   :  { %s2073_s0 = smov [#allocation11]   ;;  %s2074_s27 = smov 64  }
  0x10   :  { %s72_s26 = sshll.u32 %s2073_s0, 4  ;;  %s2075_s28 = smov 4   ;;  %s73_s26 = int_to_ptr.vmem [resolvable:$true] %s72_s26 }
  0x11   :  { %78 = dma.hbm_to_vmem [thread:$0]  %s71_s25, 3072, %s73_s26, [#allocation10], %s2074_s27, %s2074_s27, %s2075_s28  }
  0x12   :  { %2057 = dma.done.wait [#allocation4], 32  }
  0x13   :  { %2058 = vsyncadd [#allocation4], 4294967264 }
  0x14   :  { %2059 = dma.done.wait [#allocation7], 576  }
  0x15   :  { %2060 = vsyncadd [#allocation7], 4294966720 }
  0x16   :  { %2061 = dma.done.wait [#allocation10], 15360  }
  0x17   :  { %2062 = vsyncadd [#allocation10], 4294951936  ;;  %vm102_vm0 = vcmask 122880   ;;  %v2076_v0 = vmov 0   ;;  %vm106_vm1 = vcmask 57344   ;;  %vm143_vm2 = vcmask 130048  }
  0x18   :  { %103 = vst.msk [vmem:[#allocation2] sm:$0x1] %vm102_vm0, %v2076_v0  ;;  %v1275_v1 = vld [vmem:[#allocation6] sm:$0xf]  ;;  %v1775_v2 = vld [vmem:[#allocation6 + $0xc] sm:$0xf0] }
  0x19   :  { %v1773_v3 = vld [vmem:[#allocation6 + $0x4] sm:$0xf]  ;;  %v1276_v4 = vor.u32 %v1775_v2, %v1275_v1  ;;  %v1277_v5 = vld [vmem:[#allocation6 + $0x10] sm:$0xf0]  ;;  %v1283_v6 = vld [vmem:[#allocation6 + $0x8] sm:$0xf] }
  0x1a   :  { %v1776_v7 = vld [vmem:[#allocation6 + $0x14] sm:$0xf0]  ;;  %v1280_v8 = vor.u32 %v1773_v3, %v1277_v5  ;;  %v104_v10 = vld [vmem:[#allocation3] sm:$0x3]  ;;  %v1774_v11 = vld [vmem:[#allocation6 + $0xc] sm:$0xf] }
  0x1b   :  { %v1284_v9 = vor.u32 %v1776_v7, %v1283_v6  ;;  %v1285_v12 = vld [vmem:[#allocation6 + $0x18] sm:$0xf0]  ;;  %154 = vmatpush.bf16.msra.mxu3 %v1276_v4  ;;  %v105_v13 = vpack.c.bf16 %v104_v10, %v104_v10  ;;  %v1475_v15 = vld [vmem:[#allocation9 + $0x168] sm:$0xf]  ;;  %v1823_v16 = vld [vmem:[#allocation9 + $0x170] sm:$0xf0] }
  0x1c   :  { %v1288_v14 = vor.u32 %v1774_v11, %v1285_v12  ;;  %v1463_v17 = vld [vmem:[#allocation9 + $0x150] sm:$0xf]  ;;  %167 = vmatpush.bf16.msra.mxu1 %v1280_v8  ;;  %v1476_v18 = vor.u32 %v1823_v16, %v1475_v15  ;;  %v1820_v19 = vld [vmem:[#allocation9 + $0x158] sm:$0xf0]  ;;  %v1379_v20 = vld [vmem:[#allocation9 + $0xa8] sm:$0xf] }
  0x1d   :  { %180 = vmatpush.bf16.msra.mxu2 %v1284_v9  ;;  %v1799_v21 = vld [vmem:[#allocation9 + $0xb0] sm:$0xf0]  ;;  %107 = vst.msk [vmem:[#allocation2] sm:$0x1] %vm106_vm1, %v105_v13  ;;  %v1571_v23 = vld [vmem:[#allocation9 + $0x228] sm:$0xf]  ;;  %v1464_v25 = vor.u32 %v1820_v19, %v1463_v17 }
  0x1e   :  { %v1380_v22 = vor.u32 %v1799_v21, %v1379_v20  ;;  %v1847_v24 = vld [vmem:[#allocation9 + $0x230] sm:$0xf0]  ;;  %v1451_v27 = vld [vmem:[#allocation9 + $0x138] sm:$0xf]  ;;  %v1817_v28 = vld [vmem:[#allocation9 + $0x140] sm:$0xf0] }
  0x1f   :  { %193 = vmatpush.bf16.msrb.mxu3 %v1288_v14  ;;  %v1572_v26 = vor.u32 %v1847_v24, %v1571_v23  ;;  %v1367_v29 = vld [vmem:[#allocation9 + $0x90] sm:$0xf]  ;;  %v1796_v30 = vld [vmem:[#allocation9 + $0x98] sm:$0xf0]  ;;  %v1355_v35 = vld [vmem:[#allocation9 + $0x78] sm:$0xf]  ;;  %v1452_v39 = vor.u32 %v1817_v28, %v1451_v27 }
  0x20   :  { %868 = vmatpush.bf16.msrb.mxu1 %v1476_v18  ;;  %855 = vmatpush.bf16.msra.mxu0 %v1380_v22  ;;  %v1559_v31 = vld [vmem:[#allocation9 + $0x210] sm:$0xf]  ;;  %v1844_v32 = vld [vmem:[#allocation9 + $0x218] sm:$0xf0]  ;;  %v1368_v33 = vor.u32 %v1796_v30, %v1367_v29  ;;  %v1793_v36 = vld [vmem:[#allocation9 + $0x80] sm:$0xf0] }
  0x21   :  { %881 = vmatpush.bf16.msrb.mxu2 %v1572_v26  ;;  %v1560_v34 = vor.u32 %v1844_v32, %v1559_v31  ;;  %v1547_v37 = vld [vmem:[#allocation9 + $0x1f8] sm:$0xf]  ;;  %v1841_v38 = vld [vmem:[#allocation9 + $0x200] sm:$0xf0]  ;;  %v1439_v40 = vld [vmem:[#allocation9 + $0x120] sm:$0xf]  ;;  %v1356_v42 = vor.u32 %v1793_v36, %v1355_v35 }
  0x22   :  { %v1814_v41 = vld [vmem:[#allocation9 + $0x128] sm:$0xf0]  ;;  %v1548_v44 = vor.u32 %v1841_v38, %v1547_v37  ;;  %v1343_v45 = vld [vmem:[#allocation9 + $0x60] sm:$0xf]  ;;  %v1667_v50 = vld [vmem:[#allocation9 + $0x2e8] sm:$0xf] }
  0x23   :  { %v1790_v46 = vld [vmem:[#allocation9 + $0x68] sm:$0xf0]  ;;  %v1535_v47 = vld [vmem:[#allocation9 + $0x1e0] sm:$0xf]  ;;  %v1440_v49 = vor.u32 %v1814_v41, %v1439_v40  ;;  %v1871_v51 = vld [vmem:[#allocation9 + $0x2f0] sm:$0xf0] }
  0x24   :  { %869 = vmatpush.bf16.msrb.mxu1 %v1464_v25  ;;  %856 = vmatpush.bf16.msra.mxu0 %v1368_v33  ;;  %v2134_v43 = vld [vmem:[#allocation2] sm:$0x1]  ;;  %v1838_v48 = vld [vmem:[#allocation9 + $0x1e8] sm:$0xf0]  ;;  %v1427_v52 = vld [vmem:[#allocation9 + $0x108] sm:$0xf]  ;;  %v1344_v54 = vor.u32 %v1790_v46, %v1343_v45  ;;  %v1668_v55 = vor.u32 %v1871_v51, %v1667_v50 }
  0x25   :  { %882 = vmatpush.bf16.msrb.mxu2 %v1560_v34  ;;  %1289 = vmatmul.msk.bf16.vlgmr.msra.gmra.mxu3 %vm143_vm2, %v2134_v43  ;;  %v1811_v53 = vld [vmem:[#allocation9 + $0x110] sm:$0xf0]  ;;  %v1536_v56 = vor.u32 %v1838_v48, %v1535_v47  ;;  %v1331_v57 = vld [vmem:[#allocation9 + $0x48] sm:$0xf]  ;;  %v1655_v61 = vld [vmem:[#allocation9 + $0x2d0] sm:$0xf] }
  0x26   :  { %1290 = vmatmul.msk.bf16.vlgmr.msra.gmra.mxu1 %vm143_vm2, %v2134_v43  ;;  %1291 = vmatmul.msk.bf16.vlgmr.msra.gmra.mxu2 %vm143_vm2, %v2134_v43  ;;  %v1787_v58 = vld [vmem:[#allocation9 + $0x50] sm:$0xf0]  ;;  %v1523_v59 = vld [vmem:[#allocation9 + $0x1c8] sm:$0xf]  ;;  %v1868_v62 = vld [vmem:[#allocation9 + $0x2d8] sm:$0xf0]  ;;  %v1428_v63 = vor.u32 %v1811_v53, %v1427_v52 }
  0x27   :  { %v1835_v60 = vld [vmem:[#allocation9 + $0x1d0] sm:$0xf0]  ;;  %894 = vmatpush.bf16.msra.mxu3 %v1668_v55  ;;  %v1656_v0 = vor.u32 %v1868_v62, %v1655_v61  ;;  %v1415_v1 = vld [vmem:[#allocation9 + $0xf0] sm:$0xf]  ;;  %v1808_v2 = vld [vmem:[#allocation9 + $0xf8] sm:$0xf0]  ;;  %v1332_v3 = vor.u32 %v1787_v58, %v1331_v57 }
  0x28   :  { %870 = vmatpush.bf16.msrb.mxu1 %v1452_v39  ;;  %857 = vmatpush.bf16.msra.mxu0 %v1356_v42  ;;  %v1319_v4 = vld [vmem:[#allocation9 + $0x30] sm:$0xf]  ;;  %v1524_v5 = vor.u32 %v1835_v60, %v1523_v59  ;;  %v1784_v6 = vld [vmem:[#allocation9 + $0x38] sm:$0xf0]  ;;  %v1643_v7 = vld [vmem:[#allocation9 + $0x2b8] sm:$0xf]  ;;  %v1416_v12 = vor.u32 %v1808_v2, %v1415_v1 }
  0x29   :  { %883 = vmatpush.bf16.msrb.mxu2 %v1548_v44  ;;  %v1865_v8 = vld [vmem:[#allocation9 + $0x2c0] sm:$0xf0]  ;;  %v1511_v9 = vld [vmem:[#allocation9 + $0x1b0] sm:$0xf]  ;;  %v1832_v10 = vld [vmem:[#allocation9 + $0x1b8] sm:$0xf0]  ;;  %v1320_v15 = vor.u32 %v1784_v6, %v1319_v4 }
  0x2a   :  { %v1644_v11 = vor.u32 %v1865_v8, %v1643_v7  ;;  %v1403_v13 = vld [vmem:[#allocation9 + $0xd8] sm:$0xf]  ;;  %v1805_v14 = vld [vmem:[#allocation9 + $0xe0] sm:$0xf0]  ;;  %v1631_v16 = vld [vmem:[#allocation9 + $0x2a0] sm:$0xf]  ;;  %v1512_v18 = vor.u32 %v1832_v10, %v1511_v9 }
  0x2b   :  { %895 = vmatpush.bf16.msra.mxu3 %v1656_v0  ;;  %v1862_v17 = vld [vmem:[#allocation9 + $0x2a8] sm:$0xf0]  ;;  %v1307_v19 = vld [vmem:[#allocation9 + $0x18] sm:$0xf]  ;;  %v1781_v20 = vld [vmem:[#allocation9 + $0x20] sm:$0xf0]  ;;  %v1404_v23 = vor.u32 %v1805_v14, %v1403_v13 }
  0x2c   :  { %871 = vmatpush.bf16.msrb.mxu1 %v1440_v49  ;;  %858 = vmatpush.bf16.msra.mxu0 %v1344_v54  ;;  %v1499_v21 = vld [vmem:[#allocation9 + $0x198] sm:$0xf]  ;;  %v1829_v22 = vld [vmem:[#allocation9 + $0x1a0] sm:$0xf0]  ;;  %v1391_v24 = vld [vmem:[#allocation9 + $0xc0] sm:$0xf]  ;;  %v1632_v27 = vor.u32 %v1862_v17, %v1631_v16  ;;  %v1308_v29 = vor.u32 %v1781_v20, %v1307_v19 }
  0x2d   :  { %884 = vmatpush.bf16.msrb.mxu2 %v1536_v56  ;;  %v1802_v25 = vld [vmem:[#allocation9 + $0xc8] sm:$0xf0]  ;;  %v1477_v28 = vld [vmem:[#allocation9 + $0x174] sm:$0xf0]  ;;  %v1619_v30 = vld [vmem:[#allocation9 + $0x288] sm:$0xf]  ;;  %v1500_v32 = vor.u32 %v1829_v22, %v1499_v21 }
  0x2e   :  { %v1822_v26 = vld [vmem:[#allocation9 + $0x16c] sm:$0xf]  ;;  %v1859_v31 = vld [vmem:[#allocation9 + $0x290] sm:$0xf0]  ;;  %v1295_v33 = vld [vmem:[#allocation9] sm:$0xf]  ;;  %v1392_v39 = vor.u32 %v1802_v25, %v1391_v24 }
  0x2f   :  { %896 = vmatpush.bf16.msra.mxu3 %v1644_v11  ;;  %v1778_v34 = vld [vmem:[#allocation9 + $0x8] sm:$0xf0]  ;;  %v1487_v35 = vld [vmem:[#allocation9 + $0x180] sm:$0xf]  ;;  %v1381_v38 = vld [vmem:[#allocation9 + $0xb4] sm:$0xf0]  ;;  %v1620_v42 = vor.u32 %v1859_v31, %v1619_v30  ;;  %v1480_v44 = vor.u32 %v1822_v26, %v1477_v28 }
  0x30   :  { %872 = vmatpush.bf16.msrb.mxu1 %v1428_v63  ;;  %859 = vmatpush.bf16.msra.mxu0 %v1332_v3  ;;  %v1826_v36 = vld [vmem:[#allocation9 + $0x188] sm:$0xf0]  ;;  %v1573_v41 = vld [vmem:[#allocation9 + $0x234] sm:$0xf0]  ;;  %v1296_v45 = vor.u32 %v1778_v34, %v1295_v33  ;;  %v1607_v46 = vld [vmem:[#allocation9 + $0x270] sm:$0xf] }
  0x31   :  { %885 = vmatpush.bf16.msrb.mxu2 %v1524_v5  ;;  %v1798_v37 = vld [vmem:[#allocation9 + $0xac] sm:$0xf]  ;;  %v1856_v47 = vld [vmem:[#allocation9 + $0x278] sm:$0xf0]  ;;  %v1819_v48 = vld [vmem:[#allocation9 + $0x154] sm:$0xf]  ;;  %v1488_v50 = vor.u32 %v1826_v36, %v1487_v35 }
  0x32   :  { %v1846_v40 = vld [vmem:[#allocation9 + $0x22c] sm:$0xf]  ;;  %v1465_v49 = vld [vmem:[#allocation9 + $0x15c] sm:$0xf0]  ;;  %v1384_v51 = vor.u32 %v1798_v37, %v1381_v38  ;;  %v1795_v52 = vld [vmem:[#allocation9 + $0x94] sm:$0xf]  ;;  %v1608_v56 = vor.u32 %v1856_v47, %v1607_v46 }
  0x33   :  { %897 = vmatpush.bf16.msra.mxu3 %v1632_v27  ;;  %v1369_v53 = vld [vmem:[#allocation9 + $0x9c] sm:$0xf0]  ;;  %v1843_v54 = vld [vmem:[#allocation9 + $0x214] sm:$0xf]  ;;  %v1468_v57 = vor.u32 %v1819_v48, %v1465_v49  ;;  %v1595_v58 = vld [vmem:[#allocation9 + $0x258] sm:$0xf] }
  0x34   :  { %873 = vmatpush.bf16.msrb.mxu1 %v1416_v12  ;;  %860 = vmatpush.bf16.msra.mxu0 %v1320_v15  ;;  %v1561_v55 = vld [vmem:[#allocation9 + $0x21c] sm:$0xf0]  ;;  %v1853_v59 = vld [vmem:[#allocation9 + $0x260] sm:$0xf0]  ;;  %v1816_v60 = vld [vmem:[#allocation9 + $0x13c] sm:$0xf]  ;;  %v1372_v62 = vor.u32 %v1795_v52, %v1369_v53 }
  0x35   :  { %886 = vmatpush.bf16.msrb.mxu2 %v1512_v18  ;;  %1292 = vmatmul.msk.bf16.vlgmr.msrb.gmra.mxu3 %vm143_vm2, %v2134_v43  ;;  %v1576_v43 = vor.u32 %v1846_v40, %v1573_v41  ;;  %v1453_v61 = vld [vmem:[#allocation9 + $0x144] sm:$0xf0]  ;;  %v1564_v63 = vor.u32 %v1843_v54, %v1561_v55  ;;  %v1792_v0 = vld [vmem:[#allocation9 + $0x7c] sm:$0xf]  ;;  %v1596_v4 = vor.u32 %v1853_v59, %v1595_v58  ;;  %v1813_v6 = vld [vmem:[#allocation9 + $0x124] sm:$0xf] }
  0x36   :  { %v1357_v1 = vld [vmem:[#allocation9 + $0x84] sm:$0xf0]  ;;  %v1840_v2 = vld [vmem:[#allocation9 + $0x1fc] sm:$0xf]  ;;  %v1456_v5 = vor.u32 %v1816_v60, %v1453_v61  ;;  %v1441_v7 = vld [vmem:[#allocation9 + $0x12c] sm:$0xf0] }
  0x37   :  { %898 = vmatpush.bf16.msra.mxu3 %v1620_v42  ;;  %v1549_v3 = vld [vmem:[#allocation9 + $0x204] sm:$0xf0]  ;;  %v1360_v8 = vor.u32 %v1792_v0, %v1357_v1  ;;  %v1789_v10 = vld [vmem:[#allocation9 + $0x64] sm:$0xf]  ;;  %v1345_v11 = vld [vmem:[#allocation9 + $0x6c] sm:$0xf0]  ;;  %v1444_v14 = vor.u32 %v1813_v6, %v1441_v7 }
  0x38   :  { %874 = vmatpush.bf16.msrb.mxu1 %v1404_v23  ;;  %861 = vmatpush.bf16.msra.mxu0 %v1308_v29  ;;  %v1552_v9 = vor.u32 %v1840_v2, %v1549_v3  ;;  %v1837_v12 = vld [vmem:[#allocation9 + $0x1e4] sm:$0xf]  ;;  %v1537_v13 = vld [vmem:[#allocation9 + $0x1ec] sm:$0xf0]  ;;  %v1810_v15 = vld [vmem:[#allocation9 + $0x10c] sm:$0xf]  ;;  %v1348_v17 = vor.u32 %v1789_v10, %v1345_v11 }
  0x39   :  { %887 = vmatpush.bf16.msrb.mxu2 %v1500_v32  ;;  %v1429_v16 = vld [vmem:[#allocation9 + $0x114] sm:$0xf0]  ;;  %v1540_v18 = vor.u32 %v1837_v12, %v1537_v13  ;;  %v1807_v20 = vld [vmem:[#allocation9 + $0xf4] sm:$0xf]  ;;  %v1417_v21 = vld [vmem:[#allocation9 + $0xfc] sm:$0xf0] }
  0x3a   :  { %v1432_v19 = vor.u32 %v1810_v15, %v1429_v16  ;;  %v1420_v22 = vor.u32 %v1807_v20, %v1417_v21  ;;  %v1583_v23 = vld [vmem:[#allocation9 + $0x240] sm:$0xf]  ;;  %v1850_v24 = vld [vmem:[#allocation9 + $0x248] sm:$0xf0]  ;;  %v1333_v27 = vld [vmem:[#allocation9 + $0x54] sm:$0xf0] }
  0x3b   :  { %899 = vmatpush.bf16.msra.mxu3 %v1608_v56  ;;  %v1584_v25 = vor.u32 %v1850_v24, %v1583_v23  ;;  %v1786_v26 = vld [vmem:[#allocation9 + $0x4c] sm:$0xf]  ;;  %v1525_v30 = vld [vmem:[#allocation9 + $0x1d4] sm:$0xf0]  ;;  %v1804_v35 = vld [vmem:[#allocation9 + $0xdc] sm:$0xf] }
  0x3c   :  { %875 = vmatpush.bf16.msrb.mxu1 %v1392_v39  ;;  %862 = vmatpush.bf16.msra.mxu0 %v1296_v45  ;;  %v1834_v28 = vld [vmem:[#allocation9 + $0x1cc] sm:$0xf]  ;;  %v1336_v29 = vor.u32 %v1786_v26, %v1333_v27  ;;  %v1669_v32 = vld [vmem:[#allocation9 + $0x2f4] sm:$0xf0]  ;;  %v1405_v36 = vld [vmem:[#allocation9 + $0xe4] sm:$0xf0] }
  0x3d   :  { %888 = vmatpush.bf16.msrb.mxu2 %v1488_v50  ;;  %v1870_v31 = vld [vmem:[#allocation9 + $0x2ec] sm:$0xf]  ;;  %v1528_v33 = vor.u32 %v1834_v28, %v1525_v30  ;;  %v1408_v37 = vor.u32 %v1804_v35, %v1405_v36  ;;  %v1783_v38 = vld [vmem:[#allocation9 + $0x34] sm:$0xf]  ;;  %v1321_v39 = vld [vmem:[#allocation9 + $0x3c] sm:$0xf0] }
  0x3e   :  { %v1672_v34 = vor.u32 %v1870_v31, %v1669_v32  ;;  %v1831_v40 = vld [vmem:[#allocation9 + $0x1b4] sm:$0xf]  ;;  %v1324_v41 = vor.u32 %v1783_v38, %v1321_v39  ;;  %v1513_v42 = vld [vmem:[#allocation9 + $0x1bc] sm:$0xf0]  ;;  %v1801_v48 = vld [vmem:[#allocation9 + $0xc4] sm:$0xf] }
  0x3f   :  { %900 = vmatpush.bf16.msra.mxu3 %v1596_v4  ;;  %v1657_v45 = vld [vmem:[#allocation9 + $0x2dc] sm:$0xf0]  ;;  %v1516_v46 = vor.u32 %v1831_v40, %v1513_v42  ;;  %v1393_v49 = vld [vmem:[#allocation9 + $0xcc] sm:$0xf0]  ;;  %v1828_v52 = vld [vmem:[#allocation9 + $0x19c] sm:$0xf] }
  0x40   :  { %920 = vmatpush.bf16.msra.mxu1 %v1480_v44  ;;  %907 = vmatpush.bf16.msrb.mxu0 %v1384_v51  ;;  %v1867_v44 = vld [vmem:[#allocation9 + $0x2d4] sm:$0xf]  ;;  %v1396_v50 = vor.u32 %v1801_v48, %v1393_v49  ;;  %v1780_v51 = vld [vmem:[#allocation9 + $0x1c] sm:$0xf]  ;;  %v1501_v54 = vld [vmem:[#allocation9 + $0x1a4] sm:$0xf0] }
  0x41   :  { %933 = vmatpush.bf16.msra.mxu2 %v1576_v43  ;;  %v1660_v47 = vor.u32 %v1867_v44, %v1657_v45  ;;  %v1309_v43 = vld [vmem:[#allocation9 + $0x24] sm:$0xf0]  ;;  %v1864_v55 = vld [vmem:[#allocation9 + $0x2bc] sm:$0xf]  ;;  %v1777_v59 = vld [vmem:[#allocation9 + $0x4] sm:$0xf] }
  0x42   :  { %v1312_v53 = vor.u32 %v1780_v51, %v1309_v43  ;;  %v1645_v56 = vld [vmem:[#allocation9 + $0x2c4] sm:$0xf0]  ;;  %v1297_v60 = vld [vmem:[#allocation9 + $0xc] sm:$0xf0]  ;;  %v1825_v61 = vld [vmem:[#allocation9 + $0x184] sm:$0xf] }
  0x43   :  { %901 = vmatpush.bf16.msra.mxu3 %v1584_v25  ;;  %v1648_v58 = vor.u32 %v1864_v55, %v1645_v56  ;;  %v1861_v0 = vld [vmem:[#allocation9 + $0x2a4] sm:$0xf]  ;;  %v1633_v1 = vld [vmem:[#allocation9 + $0x2ac] sm:$0xf0]  ;;  %v1858_v4 = vld [vmem:[#allocation9 + $0x28c] sm:$0xf] }
  0x44   :  { %921 = vmatpush.bf16.msra.mxu1 %v1468_v57  ;;  %908 = vmatpush.bf16.msrb.mxu0 %v1372_v62  ;;  %v1504_v57 = vor.u32 %v1828_v52, %v1501_v54  ;;  %v1300_v62 = vor.u32 %v1777_v59, %v1297_v60  ;;  %v1636_v3 = vor.u32 %v1861_v0, %v1633_v1  ;;  %v1855_v7 = vld [vmem:[#allocation9 + $0x274] sm:$0xf]  ;;  %v1852_v10 = vld [vmem:[#allocation9 + $0x25c] sm:$0xf]  ;;  %v1597_v11 = vld [vmem:[#allocation9 + $0x264] sm:$0xf0] }
  0x45   :  { %934 = vmatpush.bf16.msra.mxu2 %v1564_v63  ;;  %v1489_v63 = vld [vmem:[#allocation9 + $0x18c] sm:$0xf0]  ;;  %v1600_v12 = vor.u32 %v1852_v10, %v1597_v11  ;;  %v2144_v13 = vld [vmem:[#allocation8] sm:$0xf]  ;;  %v1471_v27 = vld [vmem:[#allocation9 + $0x158] sm:$0xf] }
  0x46   :  { %v1492_v2 = vor.u32 %v1825_v61, %v1489_v63  ;;  %v1585_v15 = vld [vmem:[#allocation9 + $0x24c] sm:$0xf0]  ;;  %v1824_v21 = vld [vmem:[#allocation9 + $0x178] sm:$0xf0]  ;;  %v115_v23 = vperm.slane %v2144_v13, 0  ;;  %v117_v24 = vperm.slane %v2144_v13, 2 }
  0x47   :  { %946 = vmatpush.bf16.msrb.mxu3 %v1672_v34  ;;  %v1483_v20 = vld [vmem:[#allocation9 + $0x170] sm:$0xf]  ;;  %v1821_v28 = vld [vmem:[#allocation9 + $0x160] sm:$0xf0]  ;;  %v1459_v40 = vld [vmem:[#allocation9 + $0x140] sm:$0xf] }
  0x48   :  { %922 = vmatpush.bf16.msra.mxu1 %v1456_v5  ;;  %909 = vmatpush.bf16.msrb.mxu0 %v1360_v8  ;;  %v1621_v5 = vld [vmem:[#allocation9 + $0x294] sm:$0xf0]  ;;  %v1609_v8 = vld [vmem:[#allocation9 + $0x27c] sm:$0xf0]  ;;  %v1484_v25 = vor.u32 %v1824_v21, %v1483_v20  ;;  %v1387_v32 = vld [vmem:[#allocation9 + $0xb0] sm:$0xf]  ;;  %v1472_v35 = vor.u32 %v1821_v28, %v1471_v27 }
  0x49   :  { %935 = vmatpush.bf16.msra.mxu2 %v1552_v9  ;;  %v1624_v6 = vor.u32 %v1858_v4, %v1621_v5  ;;  %v1612_v9 = vor.u32 %v1855_v7, %v1609_v8  ;;  %v1579_v36 = vld [vmem:[#allocation9 + $0x230] sm:$0xf]  ;;  %v1797_v48 = vld [vmem:[#allocation9 + $0xa0] sm:$0xf0]  ;;  %v1567_v51 = vld [vmem:[#allocation9 + $0x218] sm:$0xf] }
  0x4a   :  { %v1845_v43 = vld [vmem:[#allocation9 + $0x220] sm:$0xf0]  ;;  %v1447_v52 = vld [vmem:[#allocation9 + $0x128] sm:$0xf]  ;;  %v1794_v59 = vld [vmem:[#allocation9 + $0x88] sm:$0xf0] }
  0x4b   :  { %947 = vmatpush.bf16.msrb.mxu3 %v1660_v47  ;;  %v1375_v47 = vld [vmem:[#allocation9 + $0x98] sm:$0xf]  ;;  %v1568_v56 = vor.u32 %v1845_v43, %v1567_v51  ;;  %v1555_v61 = vld [vmem:[#allocation9 + $0x200] sm:$0xf]  ;;  %v1435_v63 = vld [vmem:[#allocation9 + $0x110] sm:$0xf] }
  0x4c   :  { %923 = vmatpush.bf16.msra.mxu1 %v1444_v14  ;;  %910 = vmatpush.bf16.msrb.mxu0 %v1348_v17  ;;  %v1849_v14 = vld [vmem:[#allocation9 + $0x244] sm:$0xf]  ;;  %v116_v17 = vperm.slane %v2144_v13, 1  ;;  %v1376_v55 = vor.u32 %v1797_v48, %v1375_v47  ;;  %v1812_v0 = vld [vmem:[#allocation9 + $0x118] sm:$0xf0]  ;;  %s2077_s30 = smov [#allocation12]  }
  0x4d   :  { %936 = vmatpush.bf16.msra.mxu2 %v1540_v18  ;;  %v1588_v16 = vor.u32 %v1849_v14, %v1585_v15  ;;  %v1351_v4 = vld [vmem:[#allocation9 + $0x68] sm:$0xf]  ;;  %v1791_v5 = vld [vmem:[#allocation9 + $0x70] sm:$0xf0]  ;;  %v1809_v10 = vld [vmem:[#allocation9 + $0x100] sm:$0xf0] }
  0x4e   :  { %v1543_v7 = vld [vmem:[#allocation9 + $0x1e8] sm:$0xf]  ;;  %v1839_v8 = vld [vmem:[#allocation9 + $0x1f0] sm:$0xf0]  ;;  %v1675_v20 = vld [vmem:[#allocation9 + $0x2f0] sm:$0xf] }
  0x4f   :  { %948 = vmatpush.bf16.msrb.mxu3 %v1648_v58  ;;  %v1363_v58 = vld [vmem:[#allocation9 + $0x80] sm:$0xf]  ;;  %v1544_v15 = vor.u32 %v1839_v8, %v1543_v7  ;;  %v1872_v21 = vld [vmem:[#allocation9 + $0x2f8] sm:$0xf0]  ;;  %v1866_v43 = vld [vmem:[#allocation9 + $0x2c8] sm:$0xf0] }
  0x50   :  { %924 = vmatpush.bf16.msra.mxu1 %v1432_v19  ;;  %911 = vmatpush.bf16.msrb.mxu0 %v1336_v29  ;;  %v1364_v1 = vor.u32 %v1794_v59, %v1363_v58  ;;  %v1507_v47 = vld [vmem:[#allocation9 + $0x1a0] sm:$0xf]  ;;  %v1827_v58 = vld [vmem:[#allocation9 + $0x190] sm:$0xf0]  ;;  %v1639_v59 = vld [vmem:[#allocation9 + $0x2a8] sm:$0xf] }
  0x51   :  { %937 = vmatpush.bf16.msra.mxu2 %v1528_v33  ;;  %v1800_v33 = vld [vmem:[#allocation9 + $0xb8] sm:$0xf0]  ;;  %v1651_v51 = vld [vmem:[#allocation9 + $0x2c0] sm:$0xf]  ;;  %v1854_v7 = vld [vmem:[#allocation9 + $0x268] sm:$0xf0] }
  0x52   :  { %v1388_v44 = vor.u32 %v1800_v33, %v1387_v32  ;;  %v1519_v32 = vld [vmem:[#allocation9 + $0x1b8] sm:$0xf]  ;;  %v1591_v8 = vld [vmem:[#allocation9 + $0x248] sm:$0xf]  ;;  %s1259_s8 = sshll.u32 %s2077_s30, 4  ;;  %s1261_s11 = sshll.u32 %s2186_s7, 4  ;;  %s1260_s8 = int_to_ptr.vmem [resolvable:$true] %s1259_s8  ;;  %s1262_s11 = int_to_ptr.hbm [resolvable:$true] %s1261_s11 }
  0x53   :  { %949 = vmatpush.bf16.msrb.mxu3 %v1636_v3 }
  0x54   :  { %925 = vmatpush.bf16.msra.mxu1 %v1420_v22  ;;  %912 = vmatpush.bf16.msrb.mxu0 %v1324_v41  ;;  %v1818_v41 = vld [vmem:[#allocation9 + $0x148] sm:$0xf0] }
  0x55   :  { %938 = vmatpush.bf16.msra.mxu2 %v1516_v46 }
  0x57   :  { %950 = vmatpush.bf16.msrb.mxu3 %v1624_v6  ;;  %v1436_v6 = vor.u32 %v1812_v0, %v1435_v63  ;;  %v1627_v0 = vld [vmem:[#allocation9 + $0x290] sm:$0xf] }
  0x58   :  { %926 = vmatpush.bf16.msra.mxu1 %v1408_v37  ;;  %913 = vmatpush.bf16.msrb.mxu0 %v1312_v53  ;;  %v1848_v37 = vld [vmem:[#allocation9 + $0x238] sm:$0xf0]  ;;  %v1815_v53 = vld [vmem:[#allocation9 + $0x130] sm:$0xf0] }
  0x59   :  { %939 = vmatpush.bf16.msra.mxu2 %v1504_v57  ;;  %v1580_v46 = vor.u32 %v1848_v37, %v1579_v36  ;;  %v1448_v60 = vor.u32 %v1815_v53, %v1447_v52  ;;  %v1869_v36 = vld [vmem:[#allocation9 + $0x2e0] sm:$0xf0]  ;;  %v1399_v37 = vld [vmem:[#allocation9 + $0xc8] sm:$0xf] }
  0x5b   :  { %951 = vmatpush.bf16.msrb.mxu3 %v1612_v9  ;;  %v1423_v9 = vld [vmem:[#allocation9 + $0xf8] sm:$0xf] }
  0x5c   :  { %927 = vmatpush.bf16.msra.mxu1 %v1396_v50  ;;  %914 = vmatpush.bf16.msrb.mxu0 %v1300_v62  ;;  %v1460_v50 = vor.u32 %v1818_v41, %v1459_v40  ;;  %v1842_v62 = vld [vmem:[#allocation9 + $0x208] sm:$0xf0] }
  0x5d   :  { %940 = vmatpush.bf16.msra.mxu2 %v1492_v2  ;;  %v118_v2 = vperm.slane %v2144_v13, 3  ;;  %v1556_v3 = vor.u32 %v1842_v62, %v1555_v61  ;;  %v1531_v13 = vld [vmem:[#allocation9 + $0x1d0] sm:$0xf] }
  0x5f   :  { %952 = vmatpush.bf16.msrb.mxu3 %v1600_v12  ;;  %v1352_v12 = vor.u32 %v1791_v5, %v1351_v4  ;;  %v1857_v4 = vld [vmem:[#allocation9 + $0x280] sm:$0xf0] }
  0x63   :  { %953 = vmatpush.bf16.msrb.mxu3 %v1588_v16  ;;  %v1339_v16 = vld [vmem:[#allocation9 + $0x50] sm:$0xf] }
  0xa3   :  { %v169_v18 = vpop.f32.mrf.mxu1 }
  0xa4   :  { %v170_v19 = vadd.f32 %v169_v18, %v116_v17  ;;  %v1788_v17 = vld [vmem:[#allocation9 + $0x58] sm:$0xf0]  ;;  %v1424_v18 = vor.u32 %v1809_v10, %v1423_v9  ;;  %v1851_v9 = vld [vmem:[#allocation9 + $0x250] sm:$0xf0] }
  0xa5   :  { %v1592_v10 = vor.u32 %v1851_v9, %v1591_v8 }
  0xa6   :  { %v200_v22 = vmax.f32 %v170_v19, 0.0  ;;  %v1836_v19 = vld [vmem:[#allocation9 + $0x1d8] sm:$0xf0] }
  0xa7   :  { %v1532_v28 = vor.u32 %v1836_v19, %v1531_v13  ;;  %v1874_v13 = vld [vmem:[#allocation11 + $0x8] sm:$0xff]  ;;  %v1873_v19 = vld [vmem:[#allocation11] sm:$0xff] }
  0xa8   :  { %v2149_v26 = vpack.c.bf16 %v200_v22, %v200_v22  ;;  %v156_v29 = vpop.f32.mrf.mxu3 }
  0xa9   :  { %v157_v30 = vadd.f32 %v156_v29, %v115_v23  ;;  %v182_v31 = vpop.f32.mrf.mxu2  ;;  %v1411_v23 = vld [vmem:[#allocation9 + $0xe0] sm:$0xf]  ;;  %v1676_v29 = vor.u32 %v1872_v21, %v1675_v20 }
  0xaa   :  { %876 = vmatmul.bf16.vlgmr.msrb.gmra.mxu1 %v2149_v26  ;;  %v183_v34 = vadd.f32 %v182_v31, %v117_v24  ;;  %v1806_v24 = vld [vmem:[#allocation9 + $0xe8] sm:$0xf0]  ;;  %v1785_v31 = vld [vmem:[#allocation9 + $0x40] sm:$0xf0] }
  0xab   :  { %972 = vmatpush.bf16.msrb.mxu1 %v1484_v25  ;;  %v171_v38 = vpop.f32.mrf.mxu1  ;;  %v199_v39 = vmax.f32 %v157_v30, 0.0  ;;  %v1340_v25 = vor.u32 %v1788_v17, %v1339_v16  ;;  %v1327_v30 = vld [vmem:[#allocation9 + $0x38] sm:$0xf]  ;;  %v1412_v33 = vor.u32 %v1806_v24, %v1411_v23  ;;  %v1875_v16 = vld [vmem:[#allocation11 + $0x10] sm:$0xff]  ;;  %v1885_v20 = vld [vmem:[#allocation11 + $0x60] sm:$0xff] }
  0xac   :  { %v201_v42 = vmax.f32 %v183_v34, 0.0  ;;  %v1833_v34 = vld [vmem:[#allocation9 + $0x1c0] sm:$0xf0]  ;;  %v1803_v38 = vld [vmem:[#allocation9 + $0xd0] sm:$0xf0]  ;;  %v1328_v40 = vor.u32 %v1785_v31, %v1327_v30  ;;  %v1896_v23 = vld [vmem:[#allocation11 + $0xb8] sm:$0xff] }
  0xad   :  { %v2152_v45 = vpack.c.bf16 %v199_v39, %v199_v39  ;;  %v1520_v41 = vor.u32 %v1833_v34, %v1519_v32  ;;  %v1400_v48 = vor.u32 %v1803_v38, %v1399_v37  ;;  %v1887_v17 = vld [vmem:[#allocation11 + $0x70] sm:$0xff]  ;;  %v1894_v30 = vld [vmem:[#allocation11 + $0xa8] sm:$0xff]  ;;  %v335_v32 = vld [vmem:[%s2183_s4] sm:$0x7] }
  0xae   :  { %v2154_v49 = vpack.c.bf16 %v201_v42, %v201_v42  ;;  %v1881_v34 = vld [vmem:[#allocation11 + $0x40] sm:$0xff]  ;;  %v337_v37 = vperm.slane %v335_v32, 0  ;;  %v1892_v38 = vld [vmem:[#allocation11 + $0x98] sm:$0xff] }
  0xaf   :  { %973 = vmatpush.bf16.msrb.mxu1 %v1472_v35  ;;  %863 = vmatmul.bf16.vlgmr.msra.gmra.mxu0 %v2152_v45  ;;  %v1663_v35 = vld [vmem:[#allocation9 + $0x2d8] sm:$0xf] }
  0xb0   :  { %889 = vmatmul.bf16.vlgmr.msrb.gmra.mxu2 %v2154_v49  ;;  %v158_v54 = vpop.f32.mrf.mxu3  ;;  %959 = vmatpush.bf16.msra.mxu0 %v1388_v44  ;;  %v1664_v42 = vor.u32 %v1869_v36, %v1663_v35  ;;  %v1315_v44 = vld [vmem:[#allocation9 + $0x20] sm:$0xf] }
  0xb1   :  { %985 = vmatpush.bf16.msrb.mxu2 %v1580_v46  ;;  %v184_v57 = vpop.f32.mrf.mxu2  ;;  %v1782_v46 = vld [vmem:[#allocation9 + $0x28] sm:$0xf0]  ;;  %v1652_v54 = vor.u32 %v1866_v43, %v1651_v51  ;;  %v1893_v35 = vld [vmem:[#allocation11 + $0xa0] sm:$0xff] }
  0xb2   :  { %v1316_v52 = vor.u32 %v1782_v46, %v1315_v44  ;;  %v1495_v57 = vld [vmem:[#allocation9 + $0x188] sm:$0xf] }
  0xb3   :  { %974 = vmatpush.bf16.msrb.mxu1 %v1460_v50  ;;  %v1830_v50 = vld [vmem:[#allocation9 + $0x1a8] sm:$0xf0]  ;;  %v1496_v62 = vor.u32 %v1827_v58, %v1495_v57 }
  0xb4   :  { %960 = vmatpush.bf16.msra.mxu0 %v1376_v55  ;;  %v1508_v53 = vor.u32 %v1830_v50, %v1507_v47  ;;  %v1303_v55 = vld [vmem:[#allocation9 + $0x8] sm:$0xf] }
  0xb5   :  { %986 = vmatpush.bf16.msrb.mxu2 %v1568_v56  ;;  %v1779_v56 = vld [vmem:[#allocation9 + $0x10] sm:$0xf0] }
  0xb6   :  { %v1304_v61 = vor.u32 %v1779_v56, %v1303_v55  ;;  %v338_v55 = vperm.slane %v335_v32, 1 }
  0xb7   :  { %975 = vmatpush.bf16.msrb.mxu1 %v1448_v60  ;;  %v1863_v60 = vld [vmem:[#allocation9 + $0x2b0] sm:$0xf0] }
  0xb8   :  { %v195_v11 = vpop.f32.mrf.mxu3  ;;  %961 = vmatpush.bf16.msra.mxu0 %v1364_v1  ;;  %v1640_v63 = vor.u32 %v1863_v60, %v1639_v59  ;;  %v1860_v1 = vld [vmem:[#allocation9 + $0x298] sm:$0xf0] }
  0xb9   :  { %v196_v14 = vadd.f32 %v195_v11, %v118_v2  ;;  %987 = vmatpush.bf16.msrb.mxu2 %v1556_v3  ;;  %v1628_v2 = vor.u32 %v1860_v1, %v1627_v0  ;;  %v1615_v3 = vld [vmem:[#allocation9 + $0x278] sm:$0xf] }
  0xba   :  { %928 = vmatmul.bf16.vlgmr.msra.gmra.mxu1 %v2149_v26  ;;  %v1616_v5 = vor.u32 %v1857_v4, %v1615_v3  ;;  %v1880_v11 = vld [vmem:[#allocation11 + $0x38] sm:$0xff] }
  0xbb   :  { %976 = vmatpush.bf16.msrb.mxu1 %v1436_v6  ;;  %v202_v22 = vmax.f32 %v196_v14, 0.0  ;;  %v1603_v6 = vld [vmem:[#allocation9 + $0x260] sm:$0xf]  ;;  %v1876_v14 = vld [vmem:[#allocation11 + $0x18] sm:$0xff] }
  0xbc   :  { %962 = vmatpush.bf16.msra.mxu0 %v1352_v12  ;;  %v1879_v12 = vld [vmem:[#allocation11 + $0x30] sm:$0xff] }
  0xbd   :  { %v2160_v27 = vpack.c.bf16 %v202_v22, %v202_v22  ;;  %988 = vmatpush.bf16.msrb.mxu2 %v1544_v15  ;;  %v1888_v15 = vld [vmem:[#allocation11 + $0x78] sm:$0xff] }
  0xbe   :  { %v1884_v22 = vld [vmem:[#allocation11 + $0x58] sm:$0xff] }
  0xbf   :  { %977 = vmatpush.bf16.msrb.mxu1 %v1424_v18  ;;  %902 = vmatmul.bf16.vlgmr.msra.gmra.mxu3 %v2160_v27  ;;  %v1886_v18 = vld [vmem:[#allocation11 + $0x68] sm:$0xff] }
  0xc0   :  { %915 = vmatmul.bf16.vlgmr.msrb.gmra.mxu0 %v2152_v45  ;;  %941 = vmatmul.bf16.vlgmr.msra.gmra.mxu2 %v2154_v49  ;;  %v197_v39 = vpop.f32.mrf.mxu3 }
  0xc1   :  { %963 = vmatpush.bf16.msra.mxu0 %v1340_v25  ;;  %989 = vmatpush.bf16.msrb.mxu2 %v1532_v28  ;;  %v1883_v25 = vld [vmem:[#allocation11 + $0x50] sm:$0xff] }
  0xc2   :  { %998 = vmatpush.bf16.msra.mxu3 %v1676_v29  ;;  %v1882_v29 = vld [vmem:[#allocation11 + $0x48] sm:$0xff] }
  0xc3   :  { %978 = vmatpush.bf16.msrb.mxu1 %v1412_v33 }
  0xc5   :  { %964 = vmatpush.bf16.msra.mxu0 %v1328_v40  ;;  %990 = vmatpush.bf16.msrb.mxu2 %v1520_v41  ;;  %v1891_v41 = vld [vmem:[#allocation11 + $0x90] sm:$0xff] }
  0xc6   :  { %999 = vmatpush.bf16.msra.mxu3 %v1664_v42 }
  0xc7   :  { %979 = vmatpush.bf16.msrb.mxu1 %v1400_v48  ;;  %v1890_v48 = vld [vmem:[#allocation11 + $0x88] sm:$0xff] }
  0xc9   :  { %965 = vmatpush.bf16.msra.mxu0 %v1316_v52  ;;  %991 = vmatpush.bf16.msrb.mxu2 %v1508_v53 }
  0xca   :  { %1000 = vmatpush.bf16.msra.mxu3 %v1652_v54  ;;  %980 = vmatmul.bf16.vlgmr.msrb.gmra.mxu1 %v2149_v26  ;;  %v1604_v26 = vor.u32 %v1854_v7, %v1603_v6  ;;  %v1889_v54 = vld [vmem:[#allocation11 + $0x80] sm:$0xff]  ;;  %v339_v7 = vperm.slane %v335_v32, 2 }
  0xcb   :  { %1226 = vmatpush.bf16.msra.mxu1 %v1888_v15 }
  0xcd   :  { %966 = vmatpush.bf16.msra.mxu0 %v1304_v61  ;;  %992 = vmatpush.bf16.msrb.mxu2 %v1496_v62 }
  0xce   :  { %1001 = vmatpush.bf16.msra.mxu3 %v1640_v63 }
  0xcf   :  { %954 = vmatmul.bf16.vlgmr.msrb.gmra.mxu3 %v2160_v27  ;;  %1227 = vmatpush.bf16.msra.mxu1 %v1887_v17 }
  0xd0   :  { %967 = vmatmul.bf16.vlgmr.msra.gmra.mxu0 %v2152_v45  ;;  %993 = vmatmul.bf16.vlgmr.msrb.gmra.mxu2 %v2154_v49  ;;  %v1878_v45 = vld [vmem:[#allocation11 + $0x28] sm:$0xff]  ;;  %v1877_v49 = vld [vmem:[#allocation11 + $0x20] sm:$0xff] }
  0xd1   :  { %1213 = vmatpush.bf16.msrb.mxu0 %v1880_v11  ;;  %1239 = vmatpush.bf16.msra.mxu2 %v1896_v23 }
  0xd2   :  { %1002 = vmatpush.bf16.msra.mxu3 %v1628_v2 }
  0xd3   :  { %1228 = vmatpush.bf16.msra.mxu1 %v1886_v18 }
  0xd5   :  { %1214 = vmatpush.bf16.msrb.mxu0 %v1879_v12 }
  0xd6   :  { %1003 = vmatpush.bf16.msra.mxu3 %v1616_v5 }
  0xd7   :  { %1229 = vmatpush.bf16.msra.mxu1 %v1885_v20 }
  0xd9   :  { %1215 = vmatpush.bf16.msrb.mxu0 %v1878_v45 }
  0xda   :  { %1004 = vmatpush.bf16.msra.mxu3 %v1604_v26 }
  0xdb   :  { %1230 = vmatpush.bf16.msra.mxu1 %v1884_v22 }
  0xdd   :  { %1216 = vmatpush.bf16.msrb.mxu0 %v1877_v49 }
  0xde   :  { %1005 = vmatpush.bf16.msra.mxu3 %v1592_v10 }
  0xdf   :  { %1231 = vmatpush.bf16.msra.mxu1 %v1883_v25 }
  0xe1   :  { %1006 = vmatmul.bf16.vlgmr.msra.gmra.mxu3 %v2160_v27  ;;  %1217 = vmatpush.bf16.msrb.mxu0 %v1876_v14  ;;  %v1895_v27 = vld [vmem:[#allocation11 + $0xb0] sm:$0xff] }
  0xe2   :  { %1240 = vmatpush.bf16.msra.mxu2 %v1895_v27 }
  0xe3   :  { %1232 = vmatpush.bf16.msra.mxu1 %v1882_v29 }
  0xe5   :  { %1218 = vmatpush.bf16.msrb.mxu0 %v1875_v16 }
  0xe6   :  { %1241 = vmatpush.bf16.msra.mxu2 %v1894_v30 }
  0xe7   :  { %1233 = vmatpush.bf16.msra.mxu1 %v1881_v34 }
  0xe9   :  { %1219 = vmatpush.bf16.msrb.mxu0 %v1874_v13 }
  0xea   :  { %1242 = vmatpush.bf16.msra.mxu2 %v1893_v35 }
  0xed   :  { %1220 = vmatpush.bf16.msrb.mxu0 %v1873_v19  ;;  %v1910_v19 = vld [vmem:[%s2185_s6] ss:$0 sm:$0xff] }
  0xee   :  { %1243 = vmatpush.bf16.msra.mxu2 %v1892_v38 }
  0xf2   :  { %1244 = vmatpush.bf16.msra.mxu2 %v1891_v41 }
  0xf6   :  { %1245 = vmatpush.bf16.msra.mxu2 %v1890_v48 }
  0xfa   :  { %1246 = vmatpush.bf16.msra.mxu2 %v1889_v54 }
 0x127   :  { %v877_v21 = vpop.f32.mrf.mxu1 }
 0x12c   :  { %v864_v24 = vpop.f32.mrf.mxu0 }
 0x12d   :  { %v865_v39 = vadd.f32 %v864_v24, %v337_v37 }
 0x12f   :  { %v879_v28 = vpop.f32.mrf.mxu1  ;;  %v878_v46 = vadd.f32 %v877_v21, %v865_v39 }
 0x133   :  { %v890_v31 = vpop.f32.mrf.mxu2 }
 0x134   :  { %v866_v33 = vpop.f32.mrf.mxu0  ;;  %v891_v47 = vadd.f32 %v890_v31, %v878_v46 }
 0x137   :  { %v929_v36 = vpop.f32.mrf.mxu1 }
 0x13b   :  { %v892_v40 = vpop.f32.mrf.mxu2 }
 0x13d   :  { %v916_v42 = vpop.f32.mrf.mxu0 }
 0x13e   :  { %v917_v59 = vadd.f32 %v916_v42, %v338_v55 }
 0x13f   :  { %v931_v44 = vpop.f32.mrf.mxu1 }
 0x140   :  { %v930_v62 = vadd.f32 %v929_v36, %v917_v59 }
 0x142   :  { %v903_v50 = vpop.f32.mrf.mxu3 }
 0x143   :  { %v904_v51 = vadd.f32 %v903_v50, %v891_v47  ;;  %v942_v43 = vpop.f32.mrf.mxu2 }
 0x144   :  { %v943_v0 = vadd.f32 %v942_v43, %v930_v62 }
 0x145   :  { %v918_v52 = vpop.f32.mrf.mxu0  ;;  %v1011_v53 = vmax.f32 %v904_v51, 0.0 }
 0x147   :  { %v1014_v56 = vpack.c.bf16 %v1011_v53, %v1011_v53  ;;  %v981_v57 = vpop.f32.mrf.mxu1 }
 0x149   :  { %1221 = vmatmul.bf16.vlgmr.msrb.gmra.mxu0 %v1014_v56 }
 0x14a   :  { %v905_v58 = vpop.f32.mrf.mxu3 }
 0x14b   :  { %v944_v60 = vpop.f32.mrf.mxu2 }
 0x14d   :  { %v968_v61 = vpop.f32.mrf.mxu0 }
 0x14e   :  { %v969_v9 = vadd.f32 %v968_v61, %v339_v7 }
 0x14f   :  { %v983_v63 = vpop.f32.mrf.mxu1 }
 0x150   :  { %v982_v10 = vadd.f32 %v981_v57, %v969_v9 }
 0x152   :  { %v955_v1 = vpop.f32.mrf.mxu3 }
 0x153   :  { %v956_v2 = vadd.f32 %v955_v1, %v943_v0  ;;  %v994_v3 = vpop.f32.mrf.mxu2 }
 0x154   :  { %v995_v11 = vadd.f32 %v994_v3, %v982_v10 }
 0x155   :  { %v970_v4 = vpop.f32.mrf.mxu0  ;;  %v1012_v5 = vmax.f32 %v956_v2, 0.0 }
 0x157   :  { %v1015_v6 = vpack.c.bf16 %v1012_v5, %v1012_v5 }
 0x159   :  { %1234 = vmatmul.bf16.vlgmr.msra.gmra.mxu1 %v1015_v6 }
 0x15a   :  { %v957_v26 = vpop.f32.mrf.mxu3 }
 0x15b   :  { %v996_v8 = vpop.f32.mrf.mxu2 }
 0x164   :  { %v1007_v12 = vpop.f32.mrf.mxu3 }
 0x165   :  { %v1008_v45 = vadd.f32 %v1007_v12, %v995_v11 }
 0x167   :  { %v1013_v49 = vmax.f32 %v1008_v45, 0.0 }
 0x169   :  { %v1016_v14 = vpack.c.bf16 %v1013_v49, %v1013_v49 }
 0x16b   :  { %1247 = vmatmul.bf16.vlgmr.msra.gmra.mxu2 %v1016_v14 }
 0x16c   :  { %v1009_v15 = vpop.f32.mrf.mxu3 }
 0x1c6   :  { %v1222_v16 = vpop.f32.mrf.mxu0 }
 0x1c7   :  { %v1223_v20 = vadd.f32 %v1910_v19, %v1222_v16 }
 0x1ce   :  { %v1224_v17 = vpop.f32.mrf.mxu0 }
 0x1d6   :  { %v1235_v13 = vpop.f32.mrf.mxu1 }
 0x1d7   :  { %v1236_v21 = vadd.f32 %v1235_v13, %v1223_v20 }
 0x1de   :  { %v1237_v18 = vpop.f32.mrf.mxu1 }
 0x1ee   :  { %v1248_v22 = vpop.f32.mrf.mxu2 }
 0x1ef   :  { %v1249_v23 = vadd.f32 %v1248_v22, %v1236_v21 }
 0x1f1   :  { %1911 = vtanh.f32 %v1249_v23 }
 0x1f6   :  { %v1250_v24 = vpop.f32.mrf.mxu2 }
 0x1f7   :  { %v1912_v25 = vpop.eup %1911 }
 0x1f8   :  { %1253 = vst [vmem:[#allocation12] sm:$0x3] %v1912_v25 }
 0x1f9   :  { %1264 = dma.vmem_to_hbm [thread:$0]  %s1260_s8, 32, %s1262_s11, [#allocation5]  }
 0x1fa   :  { %2063 = dma.done.wait [#allocation5], 32  }
 0x1fb   :  { %2064 = vsyncadd [#allocation5], 4294967264 }
 0x1fc   :  { %1269 = vsyncpa [#allocation4], 1 }
 0x1fd   :  { %1270 = vsyncpa [#allocation7], 1 }
 0x1fe   :  { %1271 = vsyncpa [#allocation10], 1 }
 0x1ff   :  { %1272 = vsyncpa [#allocation5], 1 }

</bundles_post_ra>
